<compile_context>
chip_gen: v5e
topology: v5e:2x2
jax: 0.10.0
libtpu: 0.0.40
codegen_flags: <defaults>
</compile_context>

<pallas_src>
import math

import jax
import jax.numpy as jnp
from jax.experimental import pallas as pl
from jax.experimental.pallas import tpu as pltpu


_VMEM_CHUNK = 512                       # rows per grid step, VMEM-resident path
_HBM_CHUNK = 512                        # rows per grid step, HBM manual-DMA path
_NSEM = 16                              # DMA-semaphore ring size (HBM path)
_DEFAULT_VMEM_CAP = 64 * 1024 * 1024    # conservative default (v7x physical)
_vmem_cap_cache = None


def _round_up(x, m):
    return (x + m - 1) // m * m


def _row_group(dtype):
    """Sublane group size for full-tile stores: 8 (f32), 16 (bf16), 32 (int8)."""
    return max(8, 32 // jnp.dtype(dtype).itemsize)


def _vmem_cap_bytes():
    """Physical VMEM capacity for this generation, with a conservative fallback."""
    global _vmem_cap_cache
    if _vmem_cap_cache is None:
        cap = _DEFAULT_VMEM_CAP
        try:
            info = pltpu.get_tpu_info()
            cap = int(getattr(info, "vmem_capacity_bytes", _DEFAULT_VMEM_CAP))
            if cap <= 0:
                cap = _DEFAULT_VMEM_CAP
        except Exception:
            cap = _DEFAULT_VMEM_CAP
        _vmem_cap_cache = cap
    return _vmem_cap_cache


def _vmem_limit_bytes(cap):
    """Scoped-VMEM limit: capacity minus >=24 MiB headroom for Mosaic scratch."""
    headroom = max(24 * 1024 * 1024, cap // 6)
    return max(cap - headroom, cap // 2)


def _prep_ids(ids, n, chunk):
    """Clamp ids to [0, n) and pad to a multiple of `chunk` (pad value 0)."""
    m = ids.shape[0]
    m_pad = _round_up(max(m, 1), chunk)
    ids = jnp.clip(ids.astype(jnp.int32), 0, n - 1)
    ids_pad = jnp.zeros((m_pad,), jnp.int32).at[:m].set(ids)
    return ids_pad, m_pad


# ---------------------------------------------------------------------------
# Path 1: whole table resident in VMEM, group-of-8 vectorized row copies.
# ---------------------------------------------------------------------------
def _vmem_gather_kernel(ids_ref, table_ref, out_ref):
    # ids_ref:   SMEM scalar-prefetch ref, shape (m_pad,) int32.
    # table_ref: (N, D) embedding table, resident in VMEM (constant index_map).
    # out_ref:   (CHUNK, D) output tile for this grid step.
    chunk, _ = out_ref.shape
    group = _row_group(out_ref.dtype)
    base = pl.program_id(0) * chunk

    @pl.loop(0, chunk // group)
    def _(g):
        start = pl.multiple_of(g * group, group)
        # `group` dynamic single-row loads (statically unrolled so the LLO
        # scheduler can interleave them), assembled into one (group, D) value
        # and written with a single unmasked, sublane-aligned store.
        rows = [table_ref[pl.ds(ids_ref[base + start + r], 1), :]
                for r in range(group)]
        out_ref[pl.ds(start, group), :] = jnp.concatenate(rows, axis=0)
    # TODO(synk): where Mosaic supports it, a single jnp.take(table_ref[...],
    # ids_vec, axis=0) gather per chunk would replace this group loop entirely.


@jax.jit
def _gather_rows_vmem(table, ids):
    """out[i] = table[ids[i]] with the whole table resident in VMEM."""
    n, d = table.shape
    m = ids.shape[0]
    group = _row_group(table.dtype)
    chunk = min(_VMEM_CHUNK, _round_up(max(m, 1), group))
    ids_pad, m_pad = _prep_ids(ids, n, chunk)
    num_chunks = m_pad // chunk
    limit = _vmem_limit_bytes(_vmem_cap_bytes())

    out = pl.pallas_call(
        _vmem_gather_kernel,
        out_shape=jax.ShapeDtypeStruct((m_pad, d), table.dtype),
        grid_spec=pltpu.PrefetchScalarGridSpec(
            num_scalar_prefetch=1,
            grid=(num_chunks,),
            # Full-array block, constant index -> table stays resident in VMEM.
            in_specs=[pl.BlockSpec((n, d), lambda c, ids_sref: (0, 0))],
            # Sublane/lane-dense output tile (CHUNK multiple of 8, D lane-dense).
            out_specs=pl.BlockSpec((chunk, d), lambda c, ids_sref: (c, 0)),
        ),
        compiler_params=pltpu.CompilerParams(
            dimension_semantics=("parallel",),
            vmem_limit_bytes=limit,
        ),
    )(ids_pad, table)
    return out[:m]


# ---------------------------------------------------------------------------
# Path 2: table in HBM, chunked manual-DMA gather straight into the out block.
# ---------------------------------------------------------------------------
def _hbm_gather_kernel(ids_ref, table_hbm, out_ref, sems):
    # ids_ref:   SMEM scalar-prefetch ref, shape (m_pad,) int32.
    # table_hbm: (N, D) table left in HBM (memory_space=pl.ANY).
    # out_ref:   (CHUNK, D) output tile (manual DMAs land here directly).
    # sems:      (_NSEM,) DMA-completion semaphore ring.
    chunk, _ = out_ref.shape
    base = pl.program_id(0) * chunk

    # Issue: keep all `chunk` row DMAs in flight (round-robin over _NSEM sems),
    # writing straight into the output VMEM block (no staging copy).
    @pl.loop(0, chunk)
    def _(j):
        row = ids_ref[base + j]
        pltpu.make_async_copy(
            table_hbm.at[pl.ds(row, 1)],
            out_ref.at[pl.ds(j, 1)],
            sems.at[j % _NSEM]).start()

    # Drain: all row copies are identical (1, D) transfers, so the wait amount
    # depends only on the ref shapes -> no SMEM id reads in this loop.
    @pl.loop(0, chunk)
    def _(j):
        pltpu.make_async_copy(
            table_hbm.at[pl.ds(0, 1)],
            out_ref.at[pl.ds(j, 1)],
            sems.at[j % _NSEM]).wait()
    # TODO(synk): cross-grid-step prefetch of the next chunk's rows would need
    # manual output double-buffering (cannot target the next step's out block).


@jax.jit
def _gather_rows_hbm(table, ids):
    """out[i] = table[ids[i]] via chunked manual row DMAs from HBM."""
    n, d = table.shape
    m = ids.shape[0]
    group = _row_group(table.dtype)
    chunk = min(_HBM_CHUNK, _round_up(max(m, 1), group))
    ids_pad, m_pad = _prep_ids(ids, n, chunk)
    num_chunks = m_pad // chunk

    out = pl.pallas_call(
        _hbm_gather_kernel,
        out_shape=jax.ShapeDtypeStruct((m_pad, d), table.dtype),
        grid_spec=pltpu.PrefetchScalarGridSpec(
            num_scalar_prefetch=1,
            grid=(num_chunks,),
            in_specs=[pl.BlockSpec(memory_space=pl.ANY)],
            out_specs=pl.BlockSpec((chunk, d), lambda c, ids_sref: (c, 0)),
            scratch_shapes=[pltpu.SemaphoreType.DMA((_NSEM,))],
        ),
        compiler_params=pltpu.CompilerParams(
            dimension_semantics=("parallel",)),
    )(ids_pad, table)
    return out[:m]


def gather_rows(table, ids):
    """Pallas row gather: out[i, :] = table[ids[i], :] (a fresh copy).

    Small/medium tables (relative to this generation's VMEM) use the fully
    VMEM-resident gather; large tables use the chunked manual-DMA HBM gather.
    """
    n, d = table.shape
    table_bytes = n * d * table.dtype.itemsize
    limit = _vmem_limit_bytes(_vmem_cap_bytes())
    # The resident table block is double-buffered by the pipeline; keep
    # 2*table (+ output double-buffers + slack) within the scoped-VMEM limit.
    # TODO(synk): pipeline_mode=pl.Buffered(1) on the constant-index table block
    # would single-buffer it and roughly double this threshold again.
    if 2 * table_bytes <= int(limit * 0.6):
        return _gather_rows_vmem(table, ids)
    return _gather_rows_hbm(table, ids)


# ---------------------------------------------------------------------------
# Module
# ---------------------------------------------------------------------------
class RelGraphEmbed:
    """Embedding layer for a featureless heterograph (JAX/Pallas version).

    `num_nodes_per_ntype` stands in for the DGL graph `g` (only node counts are
    needed). Parameters use Xavier-uniform init with gain =
    nn.init.calculate_gain('relu') = sqrt(2), matching the PyTorch module.

    All node-type tables are additionally concatenated into one fused table at
    init so forward() can perform a single Pallas gather launch (per-type row
    offsets are added to the ids), amortizing launch/padding overhead across
    node types.
    """

    def __init__(self, num_nodes_per_ntype, embed_size, key,
                 embed_name="embed", pretrained=None):
        self.embed_size = embed_size
        self.embed_name = embed_name
        self.embeds = {}
        gain = math.sqrt(2.0)
        for ntype, n_nodes in num_nodes_per_ntype.items():
            key, sub = jax.random.split(key)
            if pretrained is None or pretrained != ntype:
                fan_in, fan_out = embed_size, n_nodes
                bound = gain * math.sqrt(6.0 / (fan_in + fan_out))
                self.embeds[ntype] = jax.random.uniform(
                    sub, (n_nodes, embed_size), dtype=jnp.float32,
                    minval=-bound, maxval=bound)
            # TODO(synk): pretrained == ntype would load g.nodes[ntype].data['feat'];
            # there is no graph feature store in this synthetic setting.

        # Fused table + per-type row offsets for the single-launch forward().
        self._ntypes = list(self.embeds.keys())
        self._offsets = {}
        off = 0
        for t in self._ntypes:
            self._offsets[t] = off
            off += self.embeds[t].shape[0]
        self._fused_table = (
            jnp.concatenate([self.embeds[t] for t in self._ntypes], axis=0)
            if self._ntypes else None)

    def forward(self, input_nodes, eps=1e-12):  # eps unused (kept for API parity)
        emb = {}
        types = list(input_nodes.keys())
        if not types:
            return emb
        shifted, counts = [], []
        for t in types:
            nid = input_nodes[t].astype(jnp.int32)
            n_t = self.embeds[t].shape[0]
            # Clamp within the type's own table before adding its row offset.
            shifted.append(jnp.clip(nid, 0, n_t - 1) + self._offsets[t])
            counts.append(int(nid.shape[0]))
        all_ids = jnp.concatenate(shifted)
        fused = gather_rows(self._fused_table, all_ids)
        start = 0
        for t, c in zip(types, counts):
            emb[t] = fused[start:start + c]
            start += c
        return emb

    __call__ = forward


if __name__ == "__main__":
    key = jax.random.PRNGKey(0)
    key, k_init, k_user, k_item, k_big_tbl, k_big_ids, k_many = jax.random.split(key, 7)

    # Small synthetic heterograph: two node types (module demo, VMEM-resident path,
    # fused single-launch forward).
    num_nodes = {"user": 48, "item": 64}
    embed_size = 128

    model = RelGraphEmbed(num_nodes, embed_size, k_init)

    input_nodes = {
        "user": jax.random.randint(k_user, (8,), 0, num_nodes["user"], jnp.int32),
        "item": jax.random.randint(k_item, (16,), 0, num_nodes["item"], jnp.int32),
    }

    emb = model(input_nodes)
    emb = jax.tree_util.tree_map(jax.block_until_ready, emb)

    # Correctness vs. plain-JAX gather (the Pallas gather is an exact copy).
    for ntype, nid in input_nodes.items():
        ref = jnp.take(model.embeds[ntype], nid, axis=0)
        assert emb[ntype].shape == (nid.shape[0], embed_size)
        assert emb[ntype].dtype == jnp.float32
        assert jnp.array_equal(emb[ntype], ref), f"mismatch for ntype={ntype}"

    # Multi-chunk VMEM-resident path (ids > CHUNK, with tail padding).
    many_ids = jax.random.randint(k_many, (1000,), 0, num_nodes["item"], jnp.int32)
    got = jax.block_until_ready(gather_rows(model.embeds["item"], many_ids))
    assert jnp.array_equal(got, jnp.take(model.embeds["item"], many_ids, axis=0))

    # Chunked manual-DMA HBM path, exercised explicitly (multi-chunk, direct
    # DMA into the output block) on a larger table.
    big_table = jax.random.normal(k_big_tbl, (512, embed_size), jnp.float32)
    big_ids = jax.random.randint(k_big_ids, (700,), 0, 512, jnp.int32)
    got_hbm = jax.block_until_ready(_gather_rows_hbm(big_table, big_ids))
    assert jnp.array_equal(got_hbm, jnp.take(big_table, big_ids, axis=0))

    print("KERNEL_OK")
</pallas_src>

<mosaic_0001>
module attributes {stable_mosaic.version = 11 : i64} {
  func.func @_vmem_gather_kernel(%arg0: i32, %arg1: memref<24xi32, #tpu.memory_space<smem>>, %arg2: memref<112x128xf32, #tpu.memory_space<vmem>>, %arg3: memref<24x128xf32, #tpu.memory_space<vmem>>) attributes {dimension_semantics = [#tpu.dimension_semantics<parallel>], iteration_bounds = array<i64: 1>, scalar_prefetch = 1 : i64, scratch_operands = 0 : i64, tpu.core_type = #tpu.core_type<tc>, window_params = [{pipeline_mode = #tpu.pipeline_mode<synchronous>, transform_indices = @transform_0, window_bounds = array<i64: 112, 128>}, {transform_indices = @transform_1, window_bounds = array<i64: 24, 128>}]} {
    %c24_i32 = arith.constant 24 : i32
    %0 = arith.muli %arg0, %c24_i32 : i32
    %c0_i32 = arith.constant 0 : i32
    %c3_i32 = arith.constant 3 : i32
    %1 = arith.addi %c0_i32, %c3_i32 : i32
    %c1_i32 = arith.constant 1 : i32
    scf.for %arg4 = %c0_i32 to %1 step %c1_i32  : i32 {
      %c1_i32_1 = arith.constant 1 : i32
      %2 = arith.muli %arg4, %c1_i32_1 : i32
      %c0_i32_2 = arith.constant 0 : i32
      %3 = arith.addi %c0_i32_2, %2 : i32
      %c8_i32 = arith.constant 8 : i32
      %4 = arith.muli %3, %c8_i32 : i32
      %5 = tpu.assume_multiple %4, 8 : i32
      %6 = arith.addi %0, %5 : i32
      %c0_i32_3 = arith.constant 0 : i32
      %7 = arith.addi %6, %c0_i32_3 : i32
      %8 = arith.index_cast %7 : i32 to index
      %9 = memref.load %arg1[%8] : memref<24xi32, #tpu.memory_space<smem>>
      %10 = arith.index_cast %9 : i32 to index
      %c0 = arith.constant 0 : index
      %11 = vector.load %arg2[%10, %c0] : memref<112x128xf32, #tpu.memory_space<vmem>>, vector<1x128xf32>
      %12 = arith.addi %0, %5 : i32
      %c1_i32_4 = arith.constant 1 : i32
      %13 = arith.addi %12, %c1_i32_4 : i32
      %14 = arith.index_cast %13 : i32 to index
      %15 = memref.load %arg1[%14] : memref<24xi32, #tpu.memory_space<smem>>
      %16 = arith.index_cast %15 : i32 to index
      %c0_5 = arith.constant 0 : index
      %17 = vector.load %arg2[%16, %c0_5] : memref<112x128xf32, #tpu.memory_space<vmem>>, vector<1x128xf32>
      %18 = arith.addi %0, %5 : i32
      %c2_i32 = arith.constant 2 : i32
      %19 = arith.addi %18, %c2_i32 : i32
      %20 = arith.index_cast %19 : i32 to index
      %21 = memref.load %arg1[%20] : memref<24xi32, #tpu.memory_space<smem>>
      %22 = arith.index_cast %21 : i32 to index
      %c0_6 = arith.constant 0 : index
      %23 = vector.load %arg2[%22, %c0_6] : memref<112x128xf32, #tpu.memory_space<vmem>>, vector<1x128xf32>
      %24 = arith.addi %0, %5 : i32
      %c3_i32_7 = arith.constant 3 : i32
      %25 = arith.addi %24, %c3_i32_7 : i32
      %26 = arith.index_cast %25 : i32 to index
      %27 = memref.load %arg1[%26] : memref<24xi32, #tpu.memory_space<smem>>
      %28 = arith.index_cast %27 : i32 to index
      %c0_8 = arith.constant 0 : index
      %29 = vector.load %arg2[%28, %c0_8] : memref<112x128xf32, #tpu.memory_space<vmem>>, vector<1x128xf32>
      %30 = arith.addi %0, %5 : i32
      %c4_i32 = arith.constant 4 : i32
      %31 = arith.addi %30, %c4_i32 : i32
      %32 = arith.index_cast %31 : i32 to index
      %33 = memref.load %arg1[%32] : memref<24xi32, #tpu.memory_space<smem>>
      %34 = arith.index_cast %33 : i32 to index
      %c0_9 = arith.constant 0 : index
      %35 = vector.load %arg2[%34, %c0_9] : memref<112x128xf32, #tpu.memory_space<vmem>>, vector<1x128xf32>
      %36 = arith.addi %0, %5 : i32
      %c5_i32 = arith.constant 5 : i32
      %37 = arith.addi %36, %c5_i32 : i32
      %38 = arith.index_cast %37 : i32 to index
      %39 = memref.load %arg1[%38] : memref<24xi32, #tpu.memory_space<smem>>
      %40 = arith.index_cast %39 : i32 to index
      %c0_10 = arith.constant 0 : index
      %41 = vector.load %arg2[%40, %c0_10] : memref<112x128xf32, #tpu.memory_space<vmem>>, vector<1x128xf32>
      %42 = arith.addi %0, %5 : i32
      %c6_i32 = arith.constant 6 : i32
      %43 = arith.addi %42, %c6_i32 : i32
      %44 = arith.index_cast %43 : i32 to index
      %45 = memref.load %arg1[%44] : memref<24xi32, #tpu.memory_space<smem>>
      %46 = arith.index_cast %45 : i32 to index
      %c0_11 = arith.constant 0 : index
      %47 = vector.load %arg2[%46, %c0_11] : memref<112x128xf32, #tpu.memory_space<vmem>>, vector<1x128xf32>
      %48 = arith.addi %0, %5 : i32
      %c7_i32 = arith.constant 7 : i32
      %49 = arith.addi %48, %c7_i32 : i32
      %50 = arith.index_cast %49 : i32 to index
      %51 = memref.load %arg1[%50] : memref<24xi32, #tpu.memory_space<smem>>
      %52 = arith.index_cast %51 : i32 to index
      %c0_12 = arith.constant 0 : index
      %53 = vector.load %arg2[%52, %c0_12] : memref<112x128xf32, #tpu.memory_space<vmem>>, vector<1x128xf32>
      %54 = tpu.concatenate %11, %17, %23, %29, %35, %41, %47, %53 in 0 : vector<1x128xf32>, vector<1x128xf32>, vector<1x128xf32>, vector<1x128xf32>, vector<1x128xf32>, vector<1x128xf32>, vector<1x128xf32>, vector<1x128xf32> -> vector<8x128xf32>
      %55 = arith.index_cast %5 : i32 to index
      %c0_13 = arith.constant 0 : index
      %56 = vector.load %arg3[%55, %c0_13] : memref<24x128xf32, #tpu.memory_space<vmem>>, vector<8x128xf32>
      tpu.vector_store %arg3[%55, %c0_13], %54 {strides = array<i32>} : memref<24x128xf32, #tpu.memory_space<vmem>>, vector<8x128xf32>,
    }
    %c3_i32_0 = arith.constant 3 : i32
    return
  }
  func.func @transform_0(%arg0: i32, %arg1: memref<24xi32, #tpu.memory_space<smem>>) -> (i32, i32) {
    %c0_i32 = arith.constant 0 : i32
    %c0_i32_0 = arith.constant 0 : i32
    %c0_i32_1 = arith.constant 0 : i32
    return %c0_i32, %c0_i32_0 : i32, i32
  }
  func.func @transform_1(%arg0: i32, %arg1: memref<24xi32, #tpu.memory_space<smem>>) -> (i32, i32) {
    %c0_i32 = arith.constant 0 : i32
    %c0_i32_0 = arith.constant 0 : i32
    return %arg0, %c0_i32 : i32, i32
  }
}

</mosaic_0001>

<bundles_post_ra>
// kernel: _gather_rows_vmem.1
= control target key start
LH: loop header
LB: loop body
LE: loop exit
PB: predicated region body
PF: predicated region fallthrough
CT: control target
= control target key end

     0   :  { %s233_s12 = smov [#allocation3]   ;;  %s289_s0 = inlined_call_operand.vmem [shape: s32[24], index: 0, kind: input, shape index: {}]   ;;  %s290_s1 = inlined_call_operand.hbm [shape: f32[112,128], index: 1, kind: input, shape index: {}]   ;;  %s291_s2 = inlined_call_operand.hbm [shape: f32[24,128], index: 2, kind: output, shape index: {}]  }
   0x1   :  { %s8_s11 = sshll.u32 %s289_s0, 4  ;;  %s9_s11 = int_to_ptr.vmem [resolvable:$true] %s8_s11 }
   0x2   :  { %11 = dma.vmem_to_smem %s9_s11, 16, %s233_s12, [#allocation2] }
   0x3   :  { %223 = dma.done.wait [#allocation2], 16 }
   0x4   :  { %224 = vsyncadd [#allocation2], 4294967280 }
   0x5   :  { %14 = sfence }
   0x6   :  { %15 = vsyncpa [#allocation5], 0 }
   0x7   :  { %16 = vsyncpa [#allocation6], 0  ;;  %s21_s15 = sshll.u32 %s290_s1, 4  ;;  %s234_s16 = smov [#allocation4]   ;;  %s22_s15 = int_to_ptr.hbm [resolvable:$true] %s21_s15 }
   0x8   :  { %s23_s17 = sshll.u32 %s234_s16, 4  ;;  %s235_s18 = smov 128   ;;  %s24_s17 = int_to_ptr.vmem [resolvable:$true] %s23_s17 }
   0x9   :  { %s236_s19 = smov 8  }
   0xa   :  { %29 = dma.hbm_to_vmem [thread:$0]  %s22_s15, 1792, %s24_s17, [#allocation5], %s235_s18, %s235_s18, %s236_s19  }
   0xb   :  { %225 = dma.done.wait [#allocation5], 1792  }
   0xc   :  { %226 = vsyncadd [#allocation5], 4294965504  ;;  %s262_s0 = smov 0  }
   0xd LB: > { %s268_s1 = sshll.u32 %s231_s0, 3  ;;  %vm95_vm0 = vcmask 1040384   ;;  %vm97_vm1 = vcmask 1041408   ;;  %vm99_vm2 = vcmask 1042432   ;;  %vm101_vm3 = vcmask 1043456   ;;  %s40_s0 = sadd.s32 1, %s231_s0   ;;  %s231_s0 = sphi %s262_s0, %s40_s0  }
   0xe   : > { %s43_s20 = sld [smem:[#allocation3 + %s268_s1]]  ;;  %s46_s21 = sadd.s32 1, %s268_s1  ;;  %vm103_vm4 = vcmask 1044480   ;;  %vm105_vm5 = vcmask 1045504   ;;  %vm107_vm6 = vcmask 1046528  }
   0xf   : > { %s47_s22 = sld [smem:[#allocation3 + %s46_s21]]  ;;  %s50_s23 = sadd.s32 2, %s268_s1 }
  0x10   : > { %s51_s24 = sld [smem:[#allocation3 + %s50_s23]]  ;;  %s54_s25 = sadd.s32 3, %s268_s1 }
  0x11   : > { %s55_s26 = sld [smem:[#allocation3 + %s54_s25]]  ;;  %s58_s27 = sadd.s32 4, %s268_s1 }
  0x12   : > { %s59_s28 = sld [smem:[#allocation3 + %s58_s27]]  ;;  %s62_s29 = sadd.s32 5, %s268_s1 }
  0x13   : > { %s63_s30 = sld [smem:[#allocation3 + %s62_s29]]  ;;  %s66_s3 = sadd.s32 6, %s268_s1 }
  0x14   : > { %s67_s4 = sld [smem:[#allocation3 + %s66_s3]]  ;;  %s70_s5 = sadd.s32 7, %s268_s1 }
  0x15   : > { %s44_s6 = scalar_lea.vmem [#allocation4], %s43_s20  ;;  %s48_s7 = scalar_lea.vmem [#allocation4], %s47_s22 }
  0x16   : > { %v45_v0 = vld [vmem:[%s44_s6] sm:$0x1]  ;;  %s71_s8 = sld [smem:[#allocation3 + %s70_s5]]  ;;  %s52_s9 = scalar_lea.vmem [#allocation4], %s51_s24 }
  0x17   : > { %v49_v1 = vld [vmem:[%s48_s7] sm:$0x1]  ;;  %s56_s10 = scalar_lea.vmem [#allocation4], %s55_s26  ;;  %s109_s15 = scalar_lea.vmem [#allocation7], %s268_s1 }
  0x18   : > { %v53_v2 = vld [vmem:[%s52_s9] sm:$0x1]  ;;  %v75_v3 = vrot.slane %v49_v1, 7  ;;  %s60_s11 = scalar_lea.vmem [#allocation4], %s59_s28  ;;  %p37_p0 = scmp.ge.s32.totalorder %s40_s0, 3  }
  0x19   : > { %v57_v4 = vld [vmem:[%s56_s10] sm:$0x1]  ;;  %v78_v5 = vrot.slane %v53_v2, 6  ;;  %s64_s12 = scalar_lea.vmem [#allocation4], %s63_s30  ;;  %s117_s20 = sshll.u32 (%p37_p0), %s291_s2, 4  ;;  %s118_s20 = int_to_ptr.hbm [resolvable:$true] %s117_s20 }
  0x1a   : > { %v61_v6 = vld [vmem:[%s60_s11] sm:$0x1]  ;;  %v81_v7 = vrot.slane %v57_v4, 5  ;;  %v96_v8 = vsel %vm95_vm0, %v45_v0, %v75_v3  ;;  %s68_s13 = scalar_lea.vmem [#allocation4], %s67_s4  ;;  %s237_s21 = smov (%p37_p0), [#allocation7]  }
  0x1b   : > { %v65_v9 = vld [vmem:[%s64_s12] sm:$0x1]  ;;  %v84_v10 = vrot.slane %v61_v6, 4  ;;  %v98_v11 = vsel %vm97_vm1, %v96_v8, %v78_v5  ;;  %s115_s22 = sshll.u32 (%p37_p0), %s237_s21, 4  ;;  %s116_s22 = int_to_ptr.vmem [resolvable:$true] %s115_s22 }
  0x1c   : > { %v69_v12 = vld [vmem:[%s68_s13] sm:$0x1]  ;;  %v87_v13 = vrot.slane %v65_v9, 3  ;;  %v100_v14 = vsel %vm99_vm2, %v98_v11, %v81_v7  ;;  %s72_s14 = scalar_lea.vmem [#allocation4], %s71_s8 }
  0x1d   : > { %v90_v15 = vrot.slane %v69_v12, 2  ;;  %v102_v16 = vsel %vm101_vm3, %v100_v14, %v84_v10  ;;  %v73_v17 = vld [vmem:[%s72_s14] sm:$0x1]  ;;  %39 = sbr.rel (!%p37_p0) target bundleno = 13 (0xd), region = 44 }
  0x1e   : > { %v104_v18 = vsel %vm103_vm4, %v102_v16, %v87_v13  ;;  %v93_v19 = vrot.slane %v73_v17, 1 }
  0x1f   : > { %v106_v20 = vsel %vm105_vm5, %v104_v18, %v90_v15 }
  0x20   : > { %v108_v21 = vsel %vm107_vm6, %v106_v20, %v93_v19 }
  0x21   : > { %110 = vst [vmem:[%s109_s15] sm:$0xff] %v108_v21 }
  0x22   :  { %123 = dma.vmem_to_hbm [thread:$0]  %s116_s22, 384, %s118_s20, [#allocation6], %s235_s18, %s235_s18, %s236_s19  }
  0x23   :  { %227 = dma.done.wait [#allocation6], 384  }
  0x24   :  { %228 = vsyncadd [#allocation6], 4294966912 }
  0x25   :  { %128 = vsyncpa [#allocation5], 1 }
  0x26   :  { %129 = vsyncpa [#allocation6], 1 }

</bundles_post_ra>
